<compile_context>
chip_gen: v7x
topology: tpu7x:2x2x1
jax: 0.10.0
libtpu: 0.0.40
codegen_flags: <defaults>
</compile_context>

<pallas_src>
import functools

import jax
import jax.numpy as jnp
from jax.experimental import pallas as pl
from jax.experimental.pallas import tpu as pltpu


def mlp_kernel(x_ref, w1_ref, b1_ref, w2_ref, b2_ref, o_ref):
    # x_ref : [TB, F]  untransposed batch tile (batch on sublanes)
    # w1_ref: [3, F]   PyTorch layout, resident in VMEM
    # b1_ref: [3, 1]   VMEM column (lane-broadcast)
    # w2_ref: [3] SMEM scalars, b2_ref: [1] SMEM scalar
    #
    # Linear1 on the MXU, contracting on F directly (A @ B^T):
    #   [3, F] x [TB, F] -> [3, TB]  (batch lands on the 128-lane axis).
    h = jax.lax.dot_general(
        w1_ref[...], x_ref[...],
        dimension_numbers=(((1,), (1,)), ((), ())),
        preferred_element_type=jnp.float32,
    )
    # Bias + ReLU fused on the whole [3, TB] block.
    h = jnp.maximum(h + b1_ref[...], 0.0)
    # Linear2 (K=3, N=1) as a VPU weighted sum of the 3 hidden rows
    # (no near-empty second MXU pass).
    y = (h[0:1, :] * w2_ref[0]
         + h[1:2, :] * w2_ref[1]
         + h[2:3, :] * w2_ref[2]
         + b2_ref[0])
    # Sigmoid via tanh (EUP slot) — exact, avoids an f32 divide on the VALU.
    o_ref[...] = 0.5 * (jnp.tanh(0.5 * y) + 1.0)


def _round_up(x, m):
    return ((x + m - 1) // m) * m


@functools.partial(jax.jit, static_argnames=("block_b",))
def mlp_forward(x, w1, b1, w2, b2, *, block_b=None):
    """x: [B, F] f32.  PyTorch parameter layouts: w1 [3, F], b1 [3], w2 [3], b2 [1]."""
    B, F = x.shape
    # Output is written lane-dense as [1, b_pad]; padding here is only an
    # output allocation (no copy of x).
    b_pad = _round_up(B, 128)

    # Batch tile: target ~4 MiB of x per grid step (double-buffered -> ~8 MiB),
    # comfortably inside VMEM on v5e / v6e / v7x; always a multiple of 128.
    target_tile_bytes = 4 * 1024 * 1024
    tb = max(128, min(32768, (target_tile_bytes // (F * 4)) // 128 * 128))
    if block_b is not None:
        tb = max(128, _round_up(min(block_b, tb), 128))
    tb = min(tb, b_pad)
    # Keep >= 2 batch tiles when the batch allows so v7x's 2nd TensorCore works.
    if b_pad >= 256 and pl.cdiv(b_pad, tb) < 2:
        tb = _round_up(pl.cdiv(b_pad, 2), 128)
    grid = pl.cdiv(b_pad, tb)

    # Tiny batches (< one tile): cheap pad so every block is fully in-bounds.
    # Large batches: no copy — Pallas clips the partial last block; the junk
    # tail lanes (columns >= B) are sliced off below (never reduced over).
    if B < tb:
        x = jnp.pad(x, ((0, tb - B), (0, 0)))

    out = pl.pallas_call(
        mlp_kernel,
        out_shape=jax.ShapeDtypeStruct((1, b_pad), jnp.float32),
        grid=(grid,),
        in_specs=[
            pl.BlockSpec((tb, F), lambda i: (i, 0)),   # x tile, untransposed (auto DB)
            pl.BlockSpec((3, F), lambda i: (0, 0)),    # W1 resident in VMEM
            pl.BlockSpec((3, 1), lambda i: (0, 0)),    # b1 column in VMEM
            pl.BlockSpec(memory_space=pltpu.SMEM),     # w2 scalars
            pl.BlockSpec(memory_space=pltpu.SMEM),     # b2 scalar
        ],
        out_specs=pl.BlockSpec((1, tb), lambda i: (0, i)),
        compiler_params=pltpu.CompilerParams(
            # Embarrassingly parallel over batch tiles -> shard across TCs on v7x.
            dimension_semantics=("parallel",),
            # Explicit cap: safe on v5e (128 MiB), v6e (128 MiB), v7x (64 MiB);
            # actual usage (2 x ~4 MiB x-buffers + outputs + W1) is far below it.
            vmem_limit_bytes=32 * 1024 * 1024,
        ),
        cost_estimate=pl.CostEstimate(
            flops=8 * B * F,
            transcendentals=B,
            bytes_accessed=B * F * 4 + B * 4,
        ),
    )(x, w1, b1.reshape(3, 1), w2, b2)
    return out[0, :B].reshape(B, 1)


def init_params(key, num_features):
    # Mirror torch.nn.Linear default init: U(-1/sqrt(fan_in), 1/sqrt(fan_in)).
    # Layouts match PyTorch: w1 [out=3, in=F], b1 [3]; w2 flattened [3], b2 [1].
    k1, k2, k3, k4 = jax.random.split(key, 4)
    bound1 = 1.0 / (num_features ** 0.5)
    w1 = jax.random.uniform(k1, (3, num_features), jnp.float32, -bound1, bound1)
    b1 = jax.random.uniform(k2, (3,), jnp.float32, -bound1, bound1)
    bound2 = 1.0 / (3.0 ** 0.5)
    w2 = jax.random.uniform(k3, (3,), jnp.float32, -bound2, bound2)
    b2 = jax.random.uniform(k4, (1,), jnp.float32, -bound2, bound2)
    return w1, b1, w2, b2


if __name__ == "__main__":
    num_features = 32
    batch = 8

    key = jax.random.PRNGKey(0)
    k_params, k_x = jax.random.split(key)
    w1, b1, w2, b2 = init_params(k_params, num_features)
    x = jax.random.normal(k_x, (batch, num_features), jnp.float32)

    out = mlp_forward(x, w1, b1, w2, b2)
    out = jax.block_until_ready(out)

    # Reference check with plain JAX (PyTorch semantics).
    h_ref = jnp.maximum(x @ w1.T + b1, 0.0)
    ref = jax.nn.sigmoid(h_ref @ w2[:, None] + b2)
    assert out.shape == (batch, 1)
    assert jnp.allclose(out, ref, atol=1e-5, rtol=1e-5)

    print("KERNEL_OK")
</pallas_src>

<mosaic_0001>
module attributes {stable_mosaic.version = 11 : i64} {
  func.func @mlp_kernel(%arg0: i32, %arg1: memref<128x32xf32, #tpu.memory_space<vmem>>, %arg2: memref<3x32xf32, #tpu.memory_space<vmem>>, %arg3: memref<3x1xf32, #tpu.memory_space<vmem>>, %arg4: memref<3xf32, #tpu.memory_space<smem>>, %arg5: memref<1xf32, #tpu.memory_space<smem>>, %arg6: memref<1x128xf32, #tpu.memory_space<vmem>>) attributes {dimension_semantics = [#tpu.dimension_semantics<parallel>], iteration_bounds = array<i64: 1>, scalar_prefetch = 0 : i64, scratch_operands = 0 : i64, tpu.core_type = #tpu.core_type<tc>, window_params = [{transform_indices = @transform_0, window_bounds = array<i64: 128, 32>}, {pipeline_mode = #tpu.pipeline_mode<synchronous>, transform_indices = @transform_1, window_bounds = array<i64: 3, 32>}, {pipeline_mode = #tpu.pipeline_mode<synchronous>, transform_indices = @transform_2, window_bounds = array<i64: 3, 1>}, {transform_indices = @transform_3, window_bounds = array<i64: 3>}, {transform_indices = @transform_4, window_bounds = array<i64: 1>}, {transform_indices = @transform_5, window_bounds = array<i64: 1, 128>}]} {
    %c0 = arith.constant 0 : index
    %c0_0 = arith.constant 0 : index
    %0 = vector.load %arg2[%c0, %c0_0] : memref<3x32xf32, #tpu.memory_space<vmem>>, vector<3x32xf32>
    %c0_1 = arith.constant 0 : index
    %c0_2 = arith.constant 0 : index
    %1 = vector.load %arg1[%c0_1, %c0_2] : memref<128x32xf32, #tpu.memory_space<vmem>>, vector<128x32xf32>
    %cst = arith.constant dense<0.000000e+00> : vector<3x128xf32>
    %2 = tpu.matmul %0, %1, %cst {dimension_numbers = #tpu.dot_dimension_numbers<[1], [1], [0], [0], [0, 0, 1, 0], [], []>} : vector<3x32xf32>, vector<128x32xf32>, vector<3x128xf32> -> vector<3x128xf32>
    %c0_3 = arith.constant 0 : index
    %c0_4 = arith.constant 0 : index
    %3 = vector.load %arg3[%c0_3, %c0_4] : memref<3x1xf32, #tpu.memory_space<vmem>>, vector<3x1xf32>
    %4 = vector.broadcast %3 : vector<3x1xf32> to vector<3x128xf32>
    %5 = arith.addf %2, %4 : vector<3x128xf32>
    %cst_5 = arith.constant 0.000000e+00 : f32
    %6 = vector.broadcast %cst_5 : f32 to vector<3x128xf32>
    %7 = arith.maximumf %5, %6 : vector<3x128xf32>
    %8 = vector.extract_strided_slice %7 {offsets = [0, 0], sizes = [1, 128], strides = [1, 1]} : vector<3x128xf32> to vector<1x128xf32>
    %c0_6 = arith.constant 0 : index
    %9 = memref.load %arg4[%c0_6] : memref<3xf32, #tpu.memory_space<smem>>
    %10 = vector.broadcast %9 : f32 to vector<1x128xf32>
    %11 = arith.mulf %8, %10 : vector<1x128xf32>
    %12 = vector.extract_strided_slice %7 {offsets = [1, 0], sizes = [1, 128], strides = [1, 1]} : vector<3x128xf32> to vector<1x128xf32>
    %c1 = arith.constant 1 : index
    %13 = memref.load %arg4[%c1] : memref<3xf32, #tpu.memory_space<smem>>
    %14 = vector.broadcast %13 : f32 to vector<1x128xf32>
    %15 = arith.mulf %12, %14 : vector<1x128xf32>
    %16 = arith.addf %11, %15 : vector<1x128xf32>
    %17 = vector.extract_strided_slice %7 {offsets = [2, 0], sizes = [1, 128], strides = [1, 1]} : vector<3x128xf32> to vector<1x128xf32>
    %c2 = arith.constant 2 : index
    %18 = memref.load %arg4[%c2] : memref<3xf32, #tpu.memory_space<smem>>
    %19 = vector.broadcast %18 : f32 to vector<1x128xf32>
    %20 = arith.mulf %17, %19 : vector<1x128xf32>
    %21 = arith.addf %16, %20 : vector<1x128xf32>
    %c0_7 = arith.constant 0 : index
    %22 = memref.load %arg5[%c0_7] : memref<1xf32, #tpu.memory_space<smem>>
    %23 = vector.broadcast %22 : f32 to vector<1x128xf32>
    %24 = arith.addf %21, %23 : vector<1x128xf32>
    %cst_8 = arith.constant 5.000000e-01 : f32
    %25 = vector.broadcast %cst_8 : f32 to vector<1x128xf32>
    %26 = arith.mulf %25, %24 : vector<1x128xf32>
    %27 = math.tanh %26 : vector<1x128xf32>
    %cst_9 = arith.constant 1.000000e+00 : f32
    %28 = vector.broadcast %cst_9 : f32 to vector<1x128xf32>
    %29 = arith.addf %27, %28 : vector<1x128xf32>
    %cst_10 = arith.constant 5.000000e-01 : f32
    %30 = vector.broadcast %cst_10 : f32 to vector<1x128xf32>
    %31 = arith.mulf %30, %29 : vector<1x128xf32>
    %c0_11 = arith.constant 0 : index
    %c0_12 = arith.constant 0 : index
    %32 = vector.load %arg6[%c0_11, %c0_12] : memref<1x128xf32, #tpu.memory_space<vmem>>, vector<1x128xf32>
    tpu.vector_store %arg6[%c0_11, %c0_12], %31 {strides = array<i32>} : memref<1x128xf32, #tpu.memory_space<vmem>>, vector<1x128xf32>,
    return
  }
  func.func @transform_0(%arg0: i32) -> (i32, i32) {
    %c0_i32 = arith.constant 0 : i32
    %c0_i32_0 = arith.constant 0 : i32
    return %arg0, %c0_i32 : i32, i32
  }
  func.func @transform_1(%arg0: i32) -> (i32, i32) {
    %c0_i32 = arith.constant 0 : i32
    %c0_i32_0 = arith.constant 0 : i32
    %c0_i32_1 = arith.constant 0 : i32
    return %c0_i32, %c0_i32_0 : i32, i32
  }
  func.func @transform_2(%arg0: i32) -> (i32, i32) {
    %c0_i32 = arith.constant 0 : i32
    %c0_i32_0 = arith.constant 0 : i32
    %c0_i32_1 = arith.constant 0 : i32
    return %c0_i32, %c0_i32_0 : i32, i32
  }
  func.func @transform_3(%arg0: i32) -> i32 {
    %c0_i32 = arith.constant 0 : i32
    %c0_i32_0 = arith.constant 0 : i32
    return %c0_i32 : i32
  }
  func.func @transform_4(%arg0: i32) -> i32 {
    %c0_i32 = arith.constant 0 : i32
    %c0_i32_0 = arith.constant 0 : i32
    return %c0_i32 : i32
  }
  func.func @transform_5(%arg0: i32) -> (i32, i32) {
    %c0_i32 = arith.constant 0 : i32
    %c0_i32_0 = arith.constant 0 : i32
    return %c0_i32, %arg0 : i32, i32
  }
}

</mosaic_0001>

<bundles_post_ra>
// kernel: mlp_forward.1
= control target key start
LH: loop header
LB: loop body
LE: loop exit
PB: predicated region body
PF: predicated region fallthrough
CT: control target
= control target key end

     0   :  { %11 = vsyncpa [#allocation4], 0  ;;  %s456_s0 = inlined_call_operand.vmem [shape: f32[128,32], index: 0, kind: input, shape index: {}]   ;;  %s457_s1 = inlined_call_operand.vmem [shape: f32[3,32], index: 1, kind: input, shape index: {}]   ;;  %s458_s2 = inlined_call_operand.vmem [shape: f32[3,1], index: 2, kind: input, shape index: {}]   ;;  %s459_s3 = inlined_call_operand.vmem [shape: f32[3], index: 3, kind: input, shape index: {}]   ;;  %s460_s4 = inlined_call_operand.<no memory space> [shape: f32[1], index: 4, kind: input, shape index: {}]   ;;  %s461_s5 = inlined_call_operand.vmem [shape: f32[1,128], index: 5, kind: output, shape index: {}]  }
   0x1   :  { %s24_s20 = sshll.u32 %s459_s3, 4  ;;  %s25_s20 = int_to_ptr.vmem [resolvable:$true] %s24_s20 }
   0x2   :  { %s321_s21 = scalar_lea.vmem %s25_s20, 16  ;;  %p326_p1 = scmp.lt.s32.totalorder %s25_s20, %s25_s20 }
   0x3   :  { %p322_p0 = scmp.ne.s32.totalorder %s25_s20, %s321_s21  ;;  %p327_p2 = scmp.lt.s32.totalorder %s321_s21, %s321_s21 }
   0x5   :  { %p328_p3 = por %p327_p2, %p326_p1 }
   0x7   :  { %p329_p4 = pnand %p328_p3, %p322_p0 }
   0x9   :  { %332 = shalt.err (!%p329_p4)
}
   0xa   :  { %s335_s22 = smov [#allocation3]  }
   0xb   :  { %27 = dma.vmem_to_smem %s25_s20, 16, %s335_s22, [#allocation4]  }
   0xc   :  { %333 = dma.done.wait [#allocation4], 16  }
   0xd   :  { %334 = vsyncadd [#allocation4], 4294967280 }
   0xe   :  { %33 = sfence }
   0xf   :  { %v35_v0 = vld [vmem:[%s456_s0] sm:$0xff]  ;;  %v36_v1 = vld [vmem:[%s456_s0 + $0x8] sm:$0xff]  ;;  %vm57_vm0 = vcmask 261120   ;;  %v336_v2 = vmov 0.0|0.0   ;;  %vm337_vm2 = vmmov 0   ;;  %v338_v5 = vmov 0.0  }
  0x10   :  { %281 = vmatprep.subr.bf16.mxu0 %v336_v2  ;;  %v282_v3 = vpack.c.bf16 %v36_v1, %v35_v0  ;;  %vm381_vm1 = vmpackc.low %vm57_vm0, %vm57_vm0  ;;  %278 = vmatprep.mubr.msk.f32.mxu0 %vm337_vm2, %v338_v5  ;;  %v339_v6 = vmov 0   ;;  %v37_v7 = vld [vmem:[%s456_s0 + $0x10] sm:$0xff]  ;;  %v38_v8 = vld [vmem:[%s456_s0 + $0x18] sm:$0xff]  ;;  %s227_s6 = sld [smem:[#allocation3 + $0x1]]  ;;  %s228_s7 = sld [smem:[#allocation3 + $0x2]]  ;;  %v198_v44 = vstv %s460_s4 }
  0x11   :  { %318 = vset.pattern.permute.xlu0 %v339_v6  ;;  %v51_v9 = vld [vmem:[%s458_s2] sm:$0x7]  ;;  %v286_v10 = vpack.c.bf16 %v38_v8, %v37_v7  ;;  %v40_v12 = vld [vmem:[%s456_s0 + $0x28] sm:$0xff]  ;;  %v41_v14 = vld [vmem:[%s456_s0 + $0x30] sm:$0xff]  ;;  %s180_s8 = sld [smem:[#allocation3]] }
  0x12   :  { %284 = vmatpush3.bf16.xpose.msk.msra.mxu0 %vm381_vm1, %v282_v3  ;;  %54 = vperm.xlu0 %318, %v51_v9   ;;  %v39_v11 = vld [vmem:[%s456_s0 + $0x20] sm:$0xff]  ;;  %v42_v15 = vld [vmem:[%s456_s0 + $0x38] sm:$0xff]  ;;  %v44_v18 = vld [vmem:[%s456_s0 + $0x48] sm:$0xff] }
  0x13   :  { %285 = vmatprep.subr.bf16.mxu0 %v336_v2  ;;  %v290_v13 = vpack.c.bf16 %v40_v12, %v39_v11  ;;  %v294_v16 = vpack.c.bf16 %v42_v15, %v41_v14  ;;  %v43_v17 = vld [vmem:[%s456_s0 + $0x40] sm:$0xff]  ;;  %v45_v20 = vld [vmem:[%s456_s0 + $0x50] sm:$0xff]  ;;  %v46_v21 = vld [vmem:[%s456_s0 + $0x58] sm:$0xff] }
  0x14   :  { %v298_v19 = vpack.c.bf16 %v44_v18, %v43_v17  ;;  %v302_v22 = vpack.c.bf16 %v46_v21, %v45_v20  ;;  %v47_v23 = vld [vmem:[%s456_s0 + $0x60] sm:$0xff]  ;;  %v48_v24 = vld [vmem:[%s456_s0 + $0x68] sm:$0xff]  ;;  %v49_v26 = vld [vmem:[%s456_s0 + $0x70] sm:$0xff] }
  0x15   :  { %v306_v25 = vpack.c.bf16 %v48_v24, %v47_v23  ;;  %v50_v27 = vld [vmem:[%s456_s0 + $0x78] sm:$0xff]  ;;  %v34_v29 = vld [vmem:[%s457_s1] sm:$0x7] }
  0x16   :  { %v310_v28 = vpack.c.bf16 %v50_v27, %v49_v26  ;;  %v184_v34 = vstv %s227_s6  ;;  %v191_v35 = vstv %s228_s7 }
  0x17   :  { %v181_v37 = vstv %s180_s8 }
  0x1a   :  { %288 = vmatpush3.bf16.xpose.msk.msra.mxu0 %vm381_vm1, %v286_v10 }
  0x1b   :  { %289 = vmatprep.subr.bf16.mxu0 %v336_v2 }
  0x22   :  { %292 = vmatpush3.bf16.xpose.msk.msra.mxu0 %vm381_vm1, %v290_v13 }
  0x23   :  { %293 = vmatprep.subr.bf16.mxu0 %v336_v2 }
  0x2a   :  { %296 = vmatpush3.bf16.xpose.msk.msra.mxu0 %vm381_vm1, %v294_v16 }
  0x2b   :  { %297 = vmatprep.subr.bf16.mxu0 %v336_v2 }
  0x32   :  { %300 = vmatpush3.bf16.xpose.msk.msra.mxu0 %vm381_vm1, %v298_v19 }
  0x33   :  { %301 = vmatprep.subr.bf16.mxu0 %v336_v2 }
  0x3a   :  { %304 = vmatpush3.bf16.xpose.msk.msra.mxu0 %vm381_vm1, %v302_v22 }
  0x3b   :  { %305 = vmatprep.subr.bf16.mxu0 %v336_v2 }
  0x42   :  { %308 = vmatpush3.bf16.xpose.msk.msra.mxu0 %vm381_vm1, %v306_v25 }
  0x43   :  { %309 = vmatprep.subr.bf16.mxu0 %v336_v2 }
  0x4a   :  { %312 = vmatpush3.bf16.xpose.msk.msra.mxu0 %vm381_vm1, %v310_v28 }
  0x51   :  { %279 = vmatmul.mubr.msk.f32.vlgmr.msra.gmra.mrb[0].mxu0 %vm57_vm0, %v34_v29 }
  0x91   :  { %v55_v30 = vpop.permute.xlu0 %54 }
 0x124   :  { %v175_v31 = vpop.f32.mrb[0].mxu0 }
 0x125   :  { %v176_v32 = vadd.f32 %v175_v31, %v55_v30  ;;  %v280_v33 = vpop.f32.mrb[1].mxu0 }
 0x127   :  { %v179_v36 = vmax.f32 %v176_v32, 0.0 }
 0x129   :  { %v185_v38 = vmul.f32 %v184_v34, %v179_v36  ;;  %v192_v39 = vmul.f32 %v191_v35, %v179_v36  ;;  %v182_v40 = vmul.f32 %v181_v37, %v179_v36 }
 0x12b   :  { %v187_v41 = vrot.slane %v185_v38, 1  ;;  %v194_v43 = vrot.slane %v192_v39, 2 }
 0x12d   :  { %v189_v42 = vadd.f32 %v187_v41, %v182_v40 }
 0x12f   :  { %v196_v45 = vadd.f32 %v194_v43, %v189_v42 }
 0x131   :  { %v199_v46 = vadd.f32 %v198_v44, %v196_v45 }
 0x133   :  { %v200_v47 = vmul.f32 0.5, %v199_v46 }
 0x135   :  { %319 = vtanh.f32 %v200_v47 }
 0x13f   :  { %v320_v48 = vpop.eup %319 }
 0x140   :  { %v202_v49 = vadd.f32 1.0, %v320_v48 }
 0x142   :  { %v203_v50 = vmul.f32 0.5, %v202_v49 }
 0x144   :  { %204 = vst [vmem:[%s461_s5] sm:$0x1] %v203_v50 }
 0x145   :  { %209 = vsyncpa [#allocation4], 1 }

</bundles_post_ra>
